<compile_context>
chip_gen: v5e
topology: v5e:2x2
jax: 0.10.0
libtpu: 0.0.40
codegen_flags: <defaults>
</compile_context>

<pallas_src>
import math
import numpy as np
import jax
import jax.numpy as jnp
from jax.experimental import pallas as pl
from jax.experimental.pallas import tpu as pltpu

LN_EPS = 1e-5
VMEM_LIMIT = 48 * 1024 * 1024   # stay under v7x 64 MiB / TC


# ----------------------------- in-kernel helpers -----------------------------

def _layer_norm(x, g, b):
    mu = jnp.mean(x, axis=-1, keepdims=True)
    var = jnp.mean((x - mu) ** 2, axis=-1, keepdims=True)
    return (x - mu) * jax.lax.rsqrt(var + LN_EPS) * g + b


def _bf16(x):
    return x.astype(jnp.bfloat16)


def _const_idx(ndim):
    return lambda i, _nd=ndim: (0,) * _nd


# --------------------------- text path (row-tiled) ----------------------------

def linear_ln_kernel(x_ref, w_ref, b_ref, g_ref, be_ref, o_ref):
    # y = LayerNorm(x @ W + b)
    y = jnp.dot(_bf16(x_ref[...]), w_ref[...],
                preferred_element_type=jnp.float32) + b_ref[...]
    o_ref[...] = _layer_norm(y, g_ref[...], be_ref[...])


def _row_tile(n, max_tile=512):
    for t in (512, 256, 128, 64, 32, 16, 8):
        if t <= max_tile and n % t == 0:
            return t
    return n   # fall back to full block (block dims == array dims)


def _rowwise_call(kernel, out_dim, row_arrays, const_arrays):
    """Row-tiled pallas_call for flattened [N, C] kernels.

    row_arrays share the leading N and are tiled (TILE_M, C); const_arrays
    (weights/bias/LN params) are whole-array constant-index blocks.
    """
    N = row_arrays[0].shape[0]
    tile = _row_tile(N)
    grid = (N // tile,)

    in_specs = [pl.BlockSpec((tile, a.shape[1]), lambda i: (i, 0))
                for a in row_arrays]
    in_specs += [pl.BlockSpec(a.shape, _const_idx(a.ndim)) for a in const_arrays]

    return pl.pallas_call(
        kernel,
        out_shape=jax.ShapeDtypeStruct((N, out_dim), jnp.float32),
        grid=grid,
        in_specs=in_specs,
        out_specs=pl.BlockSpec((tile, out_dim), lambda i: (i, 0)),
        compiler_params=pltpu.CompilerParams(
            dimension_semantics=("parallel",),
            vmem_limit_bytes=VMEM_LIMIT),
    )(*row_arrays, *const_arrays)


# ------------------- mel input: fused cat(pos,spk,mel)->Linear+ReLU -------------------

def make_input_kernel(B, Tm, D):
    def kernel(mel_ref, spk_ref, pos_ref, wp_ref, ws_ref, wm_ref, b_ref, o_ref):
        # concat-then-linear == sum of partial matmuls over the split weight.
        y = (jnp.einsum('td,de->te', _bf16(pos_ref[...]), wp_ref[...],
                        preferred_element_type=jnp.float32)[None, :, :]
             + jnp.einsum('bs,se->be', _bf16(spk_ref[...]), ws_ref[...],
                          preferred_element_type=jnp.float32)[:, None, :]
             + jnp.einsum('btm,me->bte', _bf16(mel_ref[...]), wm_ref[...],
                          preferred_element_type=jnp.float32)
             + b_ref[...])
        o_ref[...] = jnp.maximum(y, 0.0)
    return kernel


def pallas_input_linear(mel, spk, pos, in_params):
    B, Tm, n_mel = mel.shape
    wp, ws, wm, b = in_params
    D = wp.shape[1]
    consts = [wp, ws, wm, b]
    kernel = make_input_kernel(B, Tm, D)
    return pl.pallas_call(
        kernel,
        out_shape=jax.ShapeDtypeStruct((B, Tm, D), jnp.float32),
        grid=(1,),
        in_specs=[pl.BlockSpec(mel.shape, _const_idx(3)),
                  pl.BlockSpec(spk.shape, _const_idx(2)),
                  pl.BlockSpec(pos.shape, _const_idx(2))]
                 + [pl.BlockSpec(w.shape, _const_idx(w.ndim)) for w in consts],
        out_specs=pl.BlockSpec((B, Tm, D), _const_idx(3)),
        compiler_params=pltpu.CompilerParams(
            dimension_semantics=("arbitrary",),
            vmem_limit_bytes=VMEM_LIMIT),
    )(mel, spk, pos, *consts)


# ------------------- LConv stack: all layers in one kernel -------------------

def make_lconv_stack_kernel(B, T, D, K, NL):
    """Per layer: GLU -> mask -> head-shared depthwise conv -> residual+LN ->
    FFN -> residual+LN -> mask.  Whole batch in one block; all NL layers in a
    static Python loop so the activation never leaves VMEM."""
    pad = K // 2
    right = (K - 1) - pad

    def kernel(x_ref, m_ref,
               wg_a_ref, wg_b_ref, bg_a_ref, bg_b_ref, cw_ref,
               w1_ref, b1_ref, w2_ref, b2_ref,
               g1_ref, be1_ref, g2_ref, be2_ref,
               o_ref, ypad_ref):
        keep = 1.0 - m_ref[...]              # [B, T, 1]
        x = x_ref[...]                       # [B, T, D] f32

        # zero the halo once; it stays zero across all layers.
        if pad > 0:
            ypad_ref[:, 0:pad, :] = jnp.zeros((B, pad, D), jnp.float32)
        if right > 0:
            ypad_ref[:, pad + T:pad + T + right, :] = jnp.zeros((B, right, D),
                                                               jnp.float32)

        for l in range(NL):                  # static unroll over layers
            xb = _bf16(x)
            # GLU: weight split into two [D, D] dots -> no unaligned lane slice.
            lin = jnp.einsum('btd,de->bte', xb, wg_a_ref[l],
                             preferred_element_type=jnp.float32) + bg_a_ref[l]
            gate = jnp.einsum('btd,de->bte', xb, wg_b_ref[l],
                              preferred_element_type=jnp.float32) + bg_b_ref[l]
            y = lin * jax.nn.sigmoid(gate)
            y = y * keep

            # depthwise conv via zero-halo scratch + static slices over taps.
            ypad_ref[:, pad:pad + T, :] = y
            cw = cw_ref[l]                   # [K, D] softmax-normalized (f32)
            acc = jnp.zeros((B, T, D), jnp.float32)
            for k in range(K):               # static unroll over taps
                acc = acc + ypad_ref[:, k:k + T, :] * cw[k:k + 1, :][None, :, :]

            y = _layer_norm(x + acc, g1_ref[l], be1_ref[l])

            # FFN with residual + second (independent) LayerNorm.
            yb = _bf16(y)
            h1 = jnp.maximum(
                jnp.einsum('btd,de->bte', yb, w1_ref[l],
                           preferred_element_type=jnp.float32) + b1_ref[l], 0.0)
            h2 = jnp.einsum('btd,de->bte', _bf16(h1), w2_ref[l],
                            preferred_element_type=jnp.float32) + b2_ref[l]
            x = _layer_norm(y + h2, g2_ref[l], be2_ref[l]) * keep

        o_ref[...] = x

    return kernel


def pallas_lconv_stack(x, mask3, stacked):
    B, T, D = x.shape
    NL = stacked[0].shape[0]
    K = stacked[4].shape[1]
    consts = list(stacked)
    kernel = make_lconv_stack_kernel(B, T, D, K, NL)
    # Whole batch in one block (per-batch slabs are tiny here); tile over (B, T)
    # only once a slab exceeds the VMEM budget.
    return pl.pallas_call(
        kernel,
        out_shape=jax.ShapeDtypeStruct((B, T, D), jnp.float32),
        grid=(1,),
        in_specs=[pl.BlockSpec((B, T, D), _const_idx(3)),
                  pl.BlockSpec((B, T, 1), _const_idx(3))]
                 + [pl.BlockSpec(w.shape, _const_idx(w.ndim)) for w in consts],
        out_specs=pl.BlockSpec((B, T, D), _const_idx(3)),
        scratch_shapes=[pltpu.VMEM((B, T + K - 1, D), jnp.float32)],
        compiler_params=pltpu.CompilerParams(
            dimension_semantics=("arbitrary",),
            vmem_limit_bytes=VMEM_LIMIT),
    )(x, mask3, *consts)


# --------- head: attention + mu/log_var + reparameterize + output linear ---------

def make_head_kernel(B, Ts, Tm, D, L, S, Dn):
    scale = 1.0 / math.sqrt(D)

    def kernel(txt_ref, enc_ref, km_ref, qm_ref, eps_ref, spk_ref,
               wq_ref, bq_ref, wk_ref, bk_ref, wv_ref, bv_ref,
               wmu_ref, bmu_ref, wvar_ref, bvar_ref,
               woz_ref, wos_ref, wot_ref, bo_ref, g2_ref, be2_ref,
               out_ref, attn_ref, mu_ref, lv_ref):
        txt = txt_ref[...]                   # [B, Ts, D] f32
        txtb = _bf16(txt)
        encb = _bf16(enc_ref[...])           # [B, Tm, D]

        # variable-length attention: text queries attend over mel encoder output.
        q = jnp.einsum('bsd,de->bse', txtb, wq_ref[...],
                       preferred_element_type=jnp.float32) + bq_ref[...]
        k = jnp.einsum('bmd,de->bme', encb, wk_ref[...],
                       preferred_element_type=jnp.float32) + bk_ref[...]
        v = jnp.einsum('bmd,de->bme', encb, wv_ref[...],
                       preferred_element_type=jnp.float32) + bv_ref[...]

        scores = jnp.einsum('bse,bme->bsm', _bf16(q), _bf16(k),
                            preferred_element_type=jnp.float32) * scale
        scores = scores - 1e9 * km_ref[...]            # [B, 1, Tm] 1.0 = padded mel
        scores = scores - jnp.max(scores, axis=-1, keepdims=True)
        e = jnp.exp(scores)
        inv = pl.reciprocal(jnp.sum(e, axis=-1, keepdims=True), approx=True)
        keep = 1.0 - qm_ref[...]                       # [B, Ts, 1] 1.0 = padded text
        attn = e * inv * keep

        ao = jnp.einsum('bsm,bme->bse', _bf16(attn), _bf16(v),
                        preferred_element_type=jnp.float32)
        aob = _bf16(ao)

        # mu / log_var (masked), reparameterize (masked).
        mu = (jnp.einsum('bsd,dl->bsl', aob, wmu_ref[...],
                         preferred_element_type=jnp.float32) + bmu_ref[...]) * keep
        lv = (jnp.einsum('bsd,dl->bsl', aob, wvar_ref[...],
                         preferred_element_type=jnp.float32) + bvar_ref[...]) * keep
        z = (mu + eps_ref[...] * jnp.exp(0.5 * lv)) * keep

        # output: cat(z, speaker, text) -> Linear (as 3 partial matmuls) -> Tanh -> LN -> mask
        o = (jnp.einsum('bsl,ln->bsn', _bf16(z), woz_ref[...],
                        preferred_element_type=jnp.float32)
             + jnp.einsum('bd,dn->bn', _bf16(spk_ref[...]), wos_ref[...],
                          preferred_element_type=jnp.float32)[:, None, :]
             + jnp.einsum('bsd,dn->bsn', txtb, wot_ref[...],
                          preferred_element_type=jnp.float32)
             + bo_ref[...])
        o = _layer_norm(jnp.tanh(o), g2_ref[...], be2_ref[...])

        out_ref[...] = o * keep
        attn_ref[...] = attn
        mu_ref[...] = mu
        lv_ref[...] = lv

    return kernel


def pallas_head(text_enc, mel_enc, mel_mask_k, src_mask_q, eps, spk, params):
    B, Ts, D = text_enc.shape
    Tm = mel_enc.shape[1]
    L = params["d_latent"]
    Dn = params["d_neck"]
    wq, bq, wk, bk, wv, bv = params["attention"]
    wmu, bmu = params["fc_mu"]
    wvar, bvar = params["fc_var"]
    woz, wos, wot, bo = params["output_linear"]
    g2, be2 = params["layer_norm2"]

    row_in = [text_enc, mel_enc, mel_mask_k, src_mask_q, eps, spk]
    consts = [wq, bq, wk, bk, wv, bv, wmu, bmu, wvar, bvar,
              woz, wos, wot, bo, g2, be2]
    kernel = make_head_kernel(B, Ts, Tm, D, L, spk.shape[-1], Dn)

    # TODO(synk): at production mel lengths, tile over the query (Ts) axis with
    # K/V resident in VMEM to bound the [Ts, Tm] scores block on v7x.
    return pl.pallas_call(
        kernel,
        out_shape=(jax.ShapeDtypeStruct((B, Ts, Dn), jnp.float32),
                   jax.ShapeDtypeStruct((B, Ts, Tm), jnp.float32),
                   jax.ShapeDtypeStruct((B, Ts, L), jnp.float32),
                   jax.ShapeDtypeStruct((B, Ts, L), jnp.float32)),
        grid=(1,),
        in_specs=[pl.BlockSpec(a.shape, _const_idx(a.ndim))
                  for a in row_in + consts],
        out_specs=(pl.BlockSpec((B, Ts, Dn), _const_idx(3)),
                   pl.BlockSpec((B, Ts, Tm), _const_idx(3)),
                   pl.BlockSpec((B, Ts, L), _const_idx(3)),
                   pl.BlockSpec((B, Ts, L), _const_idx(3))),
        compiler_params=pltpu.CompilerParams(
            dimension_semantics=("arbitrary",),
            vmem_limit_bytes=VMEM_LIMIT),
    )(*row_in, *consts)


# ------------------------------ parameter setup --------------------------------

def linear_params(key, din, dout):
    scale = math.sqrt(2.0 / (din + dout))
    w = (jax.random.normal(key, (din, dout), jnp.float32) * scale).astype(jnp.bfloat16)
    b = jnp.zeros((1, dout), jnp.float32)
    return w, b


def get_sinusoid_encoding_table(n_position, d_hid, padding_idx=None):
    def cal_angle(position, hid_idx):
        return position / np.power(10000, 2 * (hid_idx // 2) / d_hid)

    def get_posi_angle_vec(position):
        return [cal_angle(position, hid_j) for hid_j in range(d_hid)]

    table = np.array([get_posi_angle_vec(p) for p in range(n_position)])
    table[:, 0::2] = np.sin(table[:, 0::2])
    table[:, 1::2] = np.cos(table[:, 1::2])
    if padding_idx is not None:
        table[padding_idx] = 0.0
    return jnp.asarray(table, jnp.float32)


# ------------------------------- full forward -----------------------------------

def residual_encoder_forward(params, mel, text_encoding, mel_mask, src_mask,
                             speaker_embedding, eps):
    B, Tm, _ = mel.shape
    Ts = text_encoding.shape[1]
    D = params["d_encoder"]
    d_latent = params["d_latent"]

    mel_mask_f = mel_mask.astype(jnp.float32)
    src_mask_f = src_mask.astype(jnp.float32)

    # ---- text path: LayerNorm(text_linear(text_encoding)) ----
    te2d = text_encoding.reshape(B * Ts, -1)
    w, b = params["text_linear"]
    g1, be1 = params["layer_norm1"]
    text_enc = _rowwise_call(linear_ln_kernel, D,
                             [te2d], [w, b, g1, be1]).reshape(B, Ts, D)

    # ---- mel path: cat(pos_enc, speaker, mel) -> Linear+ReLU (fused, no concat) ----
    pos = params["position_enc"][:Tm, :]
    enc_out = pallas_input_linear(mel, speaker_embedding, pos, params["input_linear"])

    # ---- lightweight-conv stack (all layers in one dispatch) ----
    enc_out = pallas_lconv_stack(enc_out, mel_mask_f[:, :, None], params["conv_stack"])

    # ---- attention + mu/log_var + reparameterize + output linear (one dispatch) ----
    enc_output, attn, mu, log_var = pallas_head(
        text_enc, enc_out, mel_mask_f[:, None, :], src_mask_f[:, :, None],
        eps, speaker_embedding, params)

    return enc_output, attn, mu, log_var


# ------------------------------------ main ---------------------------------------

if __name__ == "__main__":
    # config (small synthetic sizes)
    B = 2
    Tm = 16            # max_mel_len
    Ts = 8             # max_src_len
    max_seq_len = 32
    n_mel = 16
    d_enc_t = 32       # text_encoder hidden
    D = 32             # residual_encoder hidden
    d_latent = 8
    d_neck = 16
    n_layers = 2
    n_head = 2
    K = 3              # conv kernel size
    spk_dim = 16

    key = jax.random.PRNGKey(0)
    keys = iter(jax.random.split(key, 64))

    params = {
        "d_encoder": D, "d_latent": d_latent, "d_neck": d_neck,
        "text_linear": linear_params(next(keys), d_enc_t, D),
        "layer_norm1": (jnp.ones((1, D), jnp.float32), jnp.zeros((1, D), jnp.float32)),
        "position_enc": get_sinusoid_encoding_table(max_seq_len + 1, D),
        "layer_norm2": (jnp.ones((1, d_neck), jnp.float32),
                        jnp.zeros((1, d_neck), jnp.float32)),
        "fc_mu": linear_params(next(keys), D, d_latent),
        "fc_var": linear_params(next(keys), D, d_latent),
    }

    # input_linear over cat(pos, spk, mel): split weight -> 3 partial matmuls, 1 bias
    wp, b_in = linear_params(next(keys), D, D)
    ws, _ = linear_params(next(keys), spk_dim, D)
    wm, _ = linear_params(next(keys), n_mel, D)
    params["input_linear"] = (wp, ws, wm, b_in)

    # output_linear over cat(z, spk, text): split weight -> 3 partial matmuls, 1 bias
    woz, b_out = linear_params(next(keys), d_latent, d_neck)
    wos, _ = linear_params(next(keys), spk_dim, d_neck)
    wot, _ = linear_params(next(keys), D, d_neck)
    params["output_linear"] = (woz, wos, wot, b_out)

    conv_layers = []
    for _ in range(n_layers):
        wg_a, bg_a = linear_params(next(keys), D, D)   # GLU linear half
        wg_b, bg_b = linear_params(next(keys), D, D)   # GLU gate half
        cw_raw = jax.random.normal(next(keys), (n_head, K), jnp.float32)
        cw_soft = jax.nn.softmax(cw_raw, axis=-1)                  # weight_softmax=True
        cw_full = jnp.repeat(cw_soft, D // n_head, axis=0).T       # [K, D] per-channel
        w1, b1 = linear_params(next(keys), D, 4 * D)
        w2, b2 = linear_params(next(keys), 4 * D, D)
        g1 = jnp.ones((1, D), jnp.float32); be1 = jnp.zeros((1, D), jnp.float32)
        g2 = jnp.ones((1, D), jnp.float32); be2 = jnp.zeros((1, D), jnp.float32)
        conv_layers.append((wg_a, wg_b, bg_a, bg_b, cw_full,
                            w1, b1, w2, b2, g1, be1, g2, be2))
    # stack per-layer params along a leading [n_layers] axis for the single-dispatch kernel
    params["conv_stack"] = tuple(jnp.stack(arrs) for arrs in zip(*conv_layers))

    wq, bq = linear_params(next(keys), D, D)
    wk, bk = linear_params(next(keys), D, D)
    wv, bv = linear_params(next(keys), D, D)
    params["attention"] = (wq, bq, wk, bk, wv, bv)

    # inputs
    mel = jax.random.normal(next(keys), (B, Tm, n_mel), jnp.float32)
    text_encoding = jax.random.normal(next(keys), (B, Ts, d_enc_t), jnp.float32)
    speaker_embedding = jax.random.normal(next(keys), (B, spk_dim), jnp.float32)
    mel_lens = jnp.array([Tm, 12])
    src_lens = jnp.array([Ts, 6])
    mel_mask = (jnp.arange(Tm)[None, :] >= mel_lens[:, None])   # True = padded
    src_mask = (jnp.arange(Ts)[None, :] >= src_lens[:, None])
    eps = jax.random.normal(next(keys), (B, Ts, d_latent), jnp.float32)  # randn_like(std)
    # TODO(synk): dropout layers are no-ops here (eval-mode forward).

    out, attn, mu, log_var = residual_encoder_forward(
        params, mel, text_encoding, mel_mask, src_mask, speaker_embedding, eps)

    jax.block_until_ready((out, attn, mu, log_var))
    assert out.shape == (B, Ts, d_neck)
    assert attn.shape == (B, Ts, Tm)
    assert mu.shape == (B, Ts, d_latent) and log_var.shape == (B, Ts, d_latent)
    assert bool(jnp.all(jnp.isfinite(out)))
    assert bool(jnp.all(jnp.isfinite(attn)))
    print("KERNEL_OK")
</pallas_src>

<mosaic_0001>
module attributes {stable_mosaic.version = 11 : i64} {
  func.func @linear_ln_kernel(%arg0: i32, %arg1: memref<16x32xf32, #tpu.memory_space<vmem>>, %arg2: memref<32x32xbf16, #tpu.memory_space<vmem>>, %arg3: memref<1x32xf32, #tpu.memory_space<vmem>>, %arg4: memref<1x32xf32, #tpu.memory_space<vmem>>, %arg5: memref<1x32xf32, #tpu.memory_space<vmem>>, %arg6: memref<16x32xf32, #tpu.memory_space<vmem>>) attributes {dimension_semantics = [#tpu.dimension_semantics<parallel>], iteration_bounds = array<i64: 1>, scalar_prefetch = 0 : i64, scratch_operands = 0 : i64, tpu.core_type = #tpu.core_type<tc>, window_params = [{transform_indices = @transform_0, window_bounds = array<i64: 16, 32>}, {pipeline_mode = #tpu.pipeline_mode<synchronous>, transform_indices = @transform_1, window_bounds = array<i64: 32, 32>}, {pipeline_mode = #tpu.pipeline_mode<synchronous>, transform_indices = @transform_2, window_bounds = array<i64: 1, 32>}, {pipeline_mode = #tpu.pipeline_mode<synchronous>, transform_indices = @transform_3, window_bounds = array<i64: 1, 32>}, {pipeline_mode = #tpu.pipeline_mode<synchronous>, transform_indices = @transform_4, window_bounds = array<i64: 1, 32>}, {transform_indices = @transform_5, window_bounds = array<i64: 16, 32>}]} {
    %c0 = arith.constant 0 : index
    %c0_0 = arith.constant 0 : index
    %0 = vector.load %arg1[%c0, %c0_0] : memref<16x32xf32, #tpu.memory_space<vmem>>, vector<16x32xf32>
    %1 = arith.truncf %0 : vector<16x32xf32> to vector<16x32xbf16>
    %c0_1 = arith.constant 0 : index
    %c0_2 = arith.constant 0 : index
    %2 = vector.load %arg2[%c0_1, %c0_2] : memref<32x32xbf16, #tpu.memory_space<vmem>>, vector<32x32xbf16>
    %cst = arith.constant dense<0.000000e+00> : vector<16x32xf32>
    %3 = tpu.matmul %1, %2, %cst {dimension_numbers = #tpu.dot_dimension_numbers<[1], [0], [0], [1], [0, 0, 1, 1], [], []>} : vector<16x32xbf16>, vector<32x32xbf16>, vector<16x32xf32> -> vector<16x32xf32>
    %c0_3 = arith.constant 0 : index
    %c0_4 = arith.constant 0 : index
    %4 = vector.load %arg3[%c0_3, %c0_4] : memref<1x32xf32, #tpu.memory_space<vmem>>, vector<1x32xf32>
    %5 = vector.broadcast %4 : vector<1x32xf32> to vector<16x32xf32>
    %6 = arith.addf %3, %5 : vector<16x32xf32>
    %c0_5 = arith.constant 0 : index
    %c0_6 = arith.constant 0 : index
    %7 = vector.load %arg4[%c0_5, %c0_6] : memref<1x32xf32, #tpu.memory_space<vmem>>, vector<1x32xf32>
    %c0_7 = arith.constant 0 : index
    %c0_8 = arith.constant 0 : index
    %8 = vector.load %arg5[%c0_7, %c0_8] : memref<1x32xf32, #tpu.memory_space<vmem>>, vector<1x32xf32>
    %cst_9 = arith.constant dense<0.000000e+00> : vector<16xf32>
    %9 = vector.multi_reduction <add>, %6, %cst_9 [1] : vector<16x32xf32> to vector<16xf32>
    %10 = vector.shape_cast %9 : vector<16xf32> to vector<16x1xf32>
    %cst_10 = arith.constant 3.200000e+01 : f32
    %11 = vector.broadcast %cst_10 : f32 to vector<16x1xf32>
    %12 = arith.divf %10, %11 : vector<16x1xf32>
    %13 = vector.broadcast %12 : vector<16x1xf32> to vector<16x32xf32>
    %14 = arith.subf %6, %13 : vector<16x32xf32>
    %15 = arith.mulf %14, %14 : vector<16x32xf32>
    %cst_11 = arith.constant dense<0.000000e+00> : vector<16xf32>
    %16 = vector.multi_reduction <add>, %15, %cst_11 [1] : vector<16x32xf32> to vector<16xf32>
    %17 = vector.shape_cast %16 : vector<16xf32> to vector<16x1xf32>
    %cst_12 = arith.constant 3.200000e+01 : f32
    %18 = vector.broadcast %cst_12 : f32 to vector<16x1xf32>
    %19 = arith.divf %17, %18 : vector<16x1xf32>
    %20 = vector.broadcast %12 : vector<16x1xf32> to vector<16x32xf32>
    %21 = arith.subf %6, %20 : vector<16x32xf32>
    %cst_13 = arith.constant 9.99999974E-6 : f32
    %22 = vector.broadcast %cst_13 : f32 to vector<16x1xf32>
    %23 = arith.addf %19, %22 : vector<16x1xf32>
    %24 = math.rsqrt %23 : vector<16x1xf32>
    %25 = vector.broadcast %24 : vector<16x1xf32> to vector<16x32xf32>
    %26 = arith.mulf %21, %25 : vector<16x32xf32>
    %27 = vector.broadcast %7 : vector<1x32xf32> to vector<16x32xf32>
    %28 = arith.mulf %26, %27 : vector<16x32xf32>
    %29 = vector.broadcast %8 : vector<1x32xf32> to vector<16x32xf32>
    %30 = arith.addf %28, %29 : vector<16x32xf32>
    %c0_14 = arith.constant 0 : index
    %c0_15 = arith.constant 0 : index
    %31 = vector.load %arg6[%c0_14, %c0_15] : memref<16x32xf32, #tpu.memory_space<vmem>>, vector<16x32xf32>
    tpu.vector_store %arg6[%c0_14, %c0_15], %30 {strides = array<i32>} : memref<16x32xf32, #tpu.memory_space<vmem>>, vector<16x32xf32>,
    return
  }
  func.func @transform_0(%arg0: i32) -> (i32, i32) {
    %c0_i32 = arith.constant 0 : i32
    %c0_i32_0 = arith.constant 0 : i32
    return %arg0, %c0_i32 : i32, i32
  }
  func.func @transform_1(%arg0: i32) -> (i32, i32) {
    %c0_i32 = arith.constant 0 : i32
    %c0_i32_0 = arith.constant 0 : i32
    %c0_i32_1 = arith.constant 0 : i32
    return %c0_i32, %c0_i32_0 : i32, i32
  }
  func.func @transform_2(%arg0: i32) -> (i32, i32) {
    %c0_i32 = arith.constant 0 : i32
    %c0_i32_0 = arith.constant 0 : i32
    %c0_i32_1 = arith.constant 0 : i32
    return %c0_i32, %c0_i32_0 : i32, i32
  }
  func.func @transform_3(%arg0: i32) -> (i32, i32) {
    %c0_i32 = arith.constant 0 : i32
    %c0_i32_0 = arith.constant 0 : i32
    %c0_i32_1 = arith.constant 0 : i32
    return %c0_i32, %c0_i32_0 : i32, i32
  }
  func.func @transform_4(%arg0: i32) -> (i32, i32) {
    %c0_i32 = arith.constant 0 : i32
    %c0_i32_0 = arith.constant 0 : i32
    %c0_i32_1 = arith.constant 0 : i32
    return %c0_i32, %c0_i32_0 : i32, i32
  }
  func.func @transform_5(%arg0: i32) -> (i32, i32) {
    %c0_i32 = arith.constant 0 : i32
    %c0_i32_0 = arith.constant 0 : i32
    return %arg0, %c0_i32 : i32, i32
  }
}

</mosaic_0001>

<bundles_post_ra>
// kernel: tpu_custom_call.1
= control target key start
LH: loop header
LB: loop body
LE: loop exit
PB: predicated region body
PF: predicated region fallthrough
CT: control target
= control target key end

     0   :  { %10 = vsyncpa [#allocation3], 0  ;;  %s355_s0 = inlined_call_operand.hbm [shape: f32[16,32], index: 0, kind: input, shape index: {}]   ;;  %s356_s1 = inlined_call_operand.hbm [shape: bf16[32,32], index: 1, kind: input, shape index: {}]   ;;  %s357_s2 = inlined_call_operand.vmem [shape: f32[1,32], index: 2, kind: input, shape index: {}]   ;;  %s358_s3 = inlined_call_operand.vmem [shape: f32[1,32], index: 3, kind: input, shape index: {}]   ;;  %s359_s4 = inlined_call_operand.vmem [shape: f32[1,32], index: 4, kind: input, shape index: {}]   ;;  %s360_s5 = inlined_call_operand.hbm [shape: f32[16,32], index: 5, kind: output, shape index: {}]  }
   0x1   :  { %11 = vsyncpa [#allocation6], 0 }
   0x2   :  { %12 = vsyncpa [#allocation4], 0  ;;  %s17_s20 = sshll.u32 %s355_s0, 4  ;;  %s286_s21 = smov [#allocation2]   ;;  %s18_s20 = int_to_ptr.hbm [resolvable:$true] %s17_s20 }
   0x3   :  { %s19_s22 = sshll.u32 %s286_s21, 4  ;;  %s30_s25 = sshll.u32 %s356_s1, 4  ;;  %s20_s22 = int_to_ptr.vmem [resolvable:$true] %s19_s22  ;;  %s31_s25 = int_to_ptr.hbm [resolvable:$true] %s30_s25 }
   0x4   :  { %s287_s26 = smov 128   ;;  %s288_s27 = smov 8  }
   0x5   :  { %25 = dma.hbm_to_vmem [thread:$0]  %s18_s20, 256, %s20_s22, [#allocation3], %s287_s26, %s287_s26, %s288_s27  }
   0x6   :  { %s289_s28 = smov [#allocation5]   ;;  %s290_s30 = smov 64  }
   0x7   :  { %s32_s29 = sshll.u32 %s289_s28, 4  ;;  %s291_s0 = smov 4   ;;  %s33_s29 = int_to_ptr.vmem [resolvable:$true] %s32_s29 }
   0x8   :  { %38 = dma.hbm_to_vmem [thread:$0]  %s31_s25, 256, %s33_s29, [#allocation6], %s290_s30, %s290_s30, %s291_s0  }
   0x9   :  { %280 = dma.done.wait [#allocation3], 256  }
   0xa   :  { %281 = vsyncadd [#allocation3], 4294967040 }
   0xb   :  { %282 = dma.done.wait [#allocation6], 256  }
   0xc   :  { %283 = vsyncadd [#allocation6], 4294967040  ;;  %v190_v0 = vld [vmem:[#allocation5 + $0x8] sm:$0xff]  ;;  %v189_v1 = vld [vmem:[#allocation5] sm:$0xff]  ;;  %vm77_vm0 = vcmask 261120   ;;  %v292_v12 = vmov 32.0  }
   0xd   :  { %v54_v2 = vld [vmem:[#allocation2] sm:$0xff]  ;;  %87 = vmatpush.bf16.msra.mxu0 %v190_v0  ;;  %v55_v3 = vld [vmem:[#allocation2 + $0x8] sm:$0xff]  ;;  %202 = vrcp.f32 %v292_v12  ;;  %s166_s13 = sshll.u32 %s360_s5, 4  ;;  %s167_s13 = int_to_ptr.hbm [resolvable:$true] %s166_s13 }
   0xe   :  { %v56_v4 = vpack.c.bf16 %v55_v3, %v54_v2  ;;  %v199_v5 = vld [vmem:[%s357_s2] ss:$0 sm:$0xff] }
   0xf   :  { %v200_v43 = vld [vmem:[%s358_s3] ss:$0 sm:$0xff]  ;;  %s293_s3 = smov [#allocation7]  }
  0x10   :  { %v201_v47 = vld [vmem:[%s359_s4] ss:$0 sm:$0xff]  ;;  %s164_s10 = sshll.u32 %s293_s3, 4  ;;  %s165_s10 = int_to_ptr.vmem [resolvable:$true] %s164_s10 }
  0x11   :  { %88 = vmatpush.bf16.msra.mxu0 %v189_v1 }
  0x13   :  { %v203_v13 = vpop.eup %202 }
  0x14   :  { %188 = vmatmul.msk.bf16.vlgmr.msra.gmra.mxu0 %vm77_vm0, %v56_v4  ;;  %v104_v14 = vmul.f32 32.0, %v203_v13  ;;  %vm108_vm1 = vweird.f32 %v203_v13 }
  0x16   :  { %v105_v15 = vsub.f32 1.0, %v104_v14 }
  0x18   :  { %v106_v16 = vmul.f32 %v203_v13, %v105_v15 }
  0x1a   :  { %v107_v17 = vadd.f32 %v203_v13, %v106_v16 }
  0x1c   :  { %v109_v18 = vsel %vm108_vm1, %v203_v13, %v107_v17 }
  0x91   :  { %v90_v6 = vpop.f32.mrf.mxu0 }
  0x92   :  { %v91_v7 = vadd.f32 %v199_v5, %v90_v6 }
  0x94   :  { %v97_v8 = vsel %vm77_vm0, %v91_v7, 0.0 }
  0x95   :  { %98 = vadd.xlane.f32.xlu0 %v97_v8 }
  0x99   :  { %v92_v9 = vpop.f32.mrf.mxu0 }
  0x9a   :  { %v93_v10 = vadd.f32 %v199_v5, %v92_v9 }
  0x9c   :  { %v100_v11 = vsel %vm77_vm0, %v93_v10, 0.0 }
  0x9d   :  { %101 = vadd.xlane.f32.xlu0 %v100_v11 }
 0x108   :  { %v99_v19 = vpop.xlane.xlu0 %98 }
 0x109   :  { %v110_v20 = vmul.f32 %v109_v18, %v99_v19 }
 0x10b   :  { %v112_v21 = vsub.f32 %v91_v7, %v110_v20 }
 0x10d   :  { %v114_v22 = vmul.f32 %v112_v21, %v112_v21 }
 0x10f   :  { %v116_v23 = vsel %vm77_vm0, %v114_v22, 0.0 }
 0x110   :  { %117 = vadd.xlane.f32.xlu1 %v116_v23  ;;  %v102_v24 = vpop.xlane.xlu0 %101 }
 0x111   :  { %v111_v25 = vmul.f32 %v109_v18, %v102_v24 }
 0x113   :  { %v113_v26 = vsub.f32 %v93_v10, %v111_v25 }
 0x115   :  { %v115_v27 = vmul.f32 %v113_v26, %v113_v26 }
 0x117   :  { %v119_v28 = vsel %vm77_vm0, %v115_v27, 0.0 }
 0x118   :  { %120 = vadd.xlane.f32.xlu1 %v119_v28 }
 0x183   :  { %v118_v29 = vpop.xlane.xlu1 %117 }
 0x184   :  { %v122_v30 = vmul.f32 %v118_v29, %v109_v18 }
 0x186   :  { %v124_v31 = vadd.f32 1e-05, %v122_v30 }
 0x188   :  { %204 = vrsqrt.f32 %v124_v31  ;;  %vm132_vm3 = vweird.f32 %v124_v31 }
 0x18b   :  { %v121_v32 = vpop.xlane.xlu1 %120 }
 0x18c   :  { %v123_v33 = vmul.f32 %v121_v32, %v109_v18 }
 0x18e   :  { %v205_v34 = vpop.eup %204  ;;  %v125_v35 = vadd.f32 1e-05, %v123_v33 }
 0x18f   :  { %v127_v36 = vmul.f32 %v205_v34, %v124_v31  ;;  %vm133_vm2 = vweird.f32 %v205_v34 }
 0x190   :  { %206 = vrsqrt.f32 %v125_v35  ;;  %vm134_vm4 = vmor %vm132_vm3, %vm133_vm2  ;;  %vm142_vm6 = vweird.f32 %v125_v35 }
 0x191   :  { %v128_v37 = vmul.f32 %v205_v34, %v127_v36 }
 0x193   :  { %v129_v38 = vmul.f32 0.5, %v128_v37 }
 0x195   :  { %v130_v39 = vsub.f32 1.5, %v129_v38 }
 0x196   :  { %v207_v40 = vpop.eup %206 }
 0x197   :  { %v131_v41 = vmul.f32 %v205_v34, %v130_v39  ;;  %v137_v42 = vmul.f32 %v207_v40, %v125_v35  ;;  %vm143_vm5 = vweird.f32 %v207_v40 }
 0x198   :  { %vm144_vm7 = vmor %vm142_vm6, %vm143_vm5 }
 0x199   :  { %v135_v44 = vsel %vm134_vm4, %v205_v34, %v131_v41  ;;  %v138_v45 = vmul.f32 %v207_v40, %v137_v42 }
 0x19a   :  { %v146_v46 = vmul.f32 %v135_v44, %v112_v21 }
 0x19b   :  { %v139_v48 = vmul.f32 0.5, %v138_v45 }
 0x19c   :  { %v151_v49 = vmul.f32 %v200_v43, %v146_v46 }
 0x19d   :  { %v140_v50 = vsub.f32 1.5, %v139_v48 }
 0x19e   :  { %v156_v51 = vadd.f32 %v201_v47, %v151_v49 }
 0x19f   :  { %v141_v52 = vmul.f32 %v207_v40, %v140_v50 }
 0x1a0   :  { %158 = vst.msk [vmem:[#allocation7] sm:$0xff] %vm77_vm0, %v156_v51 }
 0x1a1   :  { %v145_v53 = vsel %vm144_vm7, %v207_v40, %v141_v52 }
 0x1a2   :  { %v147_v54 = vmul.f32 %v145_v53, %v113_v26 }
 0x1a4   :  { %v152_v55 = vmul.f32 %v200_v43, %v147_v54 }
 0x1a6   :  { %v157_v56 = vadd.f32 %v201_v47, %v152_v55 }
 0x1a8   :  { %159 = vst.msk [vmem:[#allocation7 + $0x8] sm:$0xff] %vm77_vm0, %v157_v56 }
 0x1a9   :  { %172 = dma.vmem_to_hbm [thread:$0]  %s165_s10, 256, %s167_s13, [#allocation4], %s287_s26, %s287_s26, %s288_s27  }
 0x1aa   :  { %284 = dma.done.wait [#allocation4], 256  }
 0x1ab   :  { %285 = vsyncadd [#allocation4], 4294967040 }
 0x1ac   :  { %177 = vsyncpa [#allocation3], 1 }
 0x1ad   :  { %178 = vsyncpa [#allocation6], 1 }
 0x1ae   :  { %179 = vsyncpa [#allocation4], 1 }

</bundles_post_ra>
